<compile_context>
chip_gen: v5e
topology: v5e:2x2
jax: 0.10.0
libtpu: 0.0.40
codegen_flags: <defaults>
</compile_context>

<pallas_src>
import jax
import jax.numpy as jnp
from jax.experimental import pallas as pl
from jax.experimental.pallas import tpu as pltpu


_LANES = 128
# 8192 rows * 128 lanes * 4 B = 4 MiB per block; double-buffered input + output
# = ~16 MiB of pipelined VMEM.  Safe on v5e/v6e/v7x with the explicit 28 MiB
# scoped-VMEM limit below, and big enough to sit near HBM roofline everywhere.
_MAX_TILE_ROWS = 8192
_VMEM_LIMIT_BYTES = 28 * 1024 * 1024


def _round_up(x, m):
    return (x + m - 1) // m * m


def _wm_roundtrip_kernel(x_ref, o_ref):
    # x_ref / o_ref: (tile_r, 128) VMEM tiles, float32.
    x = x_ref[...]
    # torch: ((x + 1) / 2) * 255 + 0.5, clamp to [0, 255], cast to uint8.
    # Fused: x * 127.5 + 128.0.  Values are >= 0 after the clip, so floor()
    # reproduces the uint8 truncation exactly.
    q = jnp.floor(jnp.clip(x * 127.5 + 128.0, 0.0, 255.0))
    # (encode is identity -> NHWC/NCHW permutes cancel)
    # torch: out = out / 255 ; out = 2 * out - 1   ==>   q * (2/255) - 1.
    o_ref[...] = q * (2.0 / 255.0) - 1.0


@jax.jit
def watermark_encoder_model_forward(x0):
    """Pallas implementation of WatermarkEncoderModel.forward.

    x0: float32 NCHW array with values in [-1, 1].
    Returns a float32 NCHW array (same shape/dtype): the quantize/dequantize
    round-trip of the reference module (encode step = identity).
    """
    n, c, h, w = x0.shape
    total = n * c * h * w

    # Flatten the whole batch into one lane-dense slab.  Only pad when the
    # element count is not 128-divisible (rare; tiny copy).  The row count is
    # NOT rounded to a tile multiple -- ragged last blocks are masked by Pallas.
    rows = pl.cdiv(total, _LANES)
    padded_total = rows * _LANES

    x_flat = x0.reshape(-1)
    if padded_total != total:
        x_flat = jnp.pad(x_flat, (0, padded_total - total))
    x_slab = x_flat.reshape(rows, _LANES)

    # Tile policy:
    #  * small inputs (rows < 16): one full-extent block (always a legal
    #    block_shape since it equals the array dims).
    #  * otherwise: split into >= 2 blocks (8-row aligned) so v7x's two
    #    TensorCores both get work under dimension_semantics=("parallel",),
    #    capped at _MAX_TILE_ROWS to bound VMEM.
    if rows >= 16:
        tile_r = min(_MAX_TILE_ROWS, _round_up(pl.cdiv(rows, 2), 8))
    else:
        tile_r = rows
    grid = (pl.cdiv(rows, tile_r),)

    out_slab = pl.pallas_call(
        _wm_roundtrip_kernel,
        out_shape=jax.ShapeDtypeStruct((rows, _LANES), jnp.float32),
        grid_spec=pltpu.PrefetchScalarGridSpec(
            num_scalar_prefetch=0,
            grid=grid,
            in_specs=[pl.BlockSpec((tile_r, _LANES), lambda i: (i, 0))],
            out_specs=pl.BlockSpec((tile_r, _LANES), lambda i: (i, 0)),
        ),
        compiler_params=pltpu.CompilerParams(
            dimension_semantics=("parallel",),
            vmem_limit_bytes=_VMEM_LIMIT_BYTES),
        cost_estimate=pl.CostEstimate(
            flops=7 * padded_total,
            transcendentals=0,
            bytes_accessed=8 * padded_total),
    )(x_slab)

    out_flat = out_slab.reshape(-1)
    if padded_total != total:
        out_flat = out_flat[:total]
    return out_flat.reshape(n, c, h, w)


def _reference(x0):
    # Pure-JAX reference mirroring the PyTorch op order (encode = identity).
    t = (x0 + 1.0) / 2.0
    t = jnp.clip(t * 255.0 + 0.5, 0.0, 255.0)
    q = jnp.floor(t)  # uint8 cast (values are non-negative after the clip)
    out = q / 255.0
    return 2.0 * out - 1.0


def _check(x0):
    y = jax.block_until_ready(watermark_encoder_model_forward(x0))
    y_ref = _reference(x0)
    assert y.shape == x0.shape and y.dtype == jnp.float32
    # The fused pre-floor constants can differ from torch's op order by ~1 ulp,
    # which at an exact uint8 boundary would flip floor() by one quantization
    # step (2/255 in output space).  Bound the error by that single step.
    diff = jnp.abs(y - y_ref)
    assert float(jnp.max(diff)) <= 2.0 / 255.0 + 1e-6, "mismatch vs reference"


if __name__ == "__main__":
    key = jax.random.PRNGKey(0)
    k0, k1, k2 = jax.random.split(key, 3)

    # Primary case: batch=2, 3-channel RGB, 16x16 (128-divisible, no padding).
    x0 = jax.random.uniform(k0, (2, 3, 16, 16), dtype=jnp.float32,
                            minval=-1.0, maxval=1.0)
    _check(x0)

    # Padding path: per-image element count not divisible by 128.
    x1 = jax.random.uniform(k1, (1, 3, 7, 5), dtype=jnp.float32,
                            minval=-1.0, maxval=1.0)
    _check(x1)

    # Multi-block path with a ragged last block (rows not a tile multiple).
    x2 = jax.random.uniform(k2, (1, 3, 96, 96), dtype=jnp.float32,
                            minval=-1.0, maxval=1.0)
    _check(x2)

    print("KERNEL_OK")
</pallas_src>

<mosaic_0001>
module attributes {stable_mosaic.version = 11 : i64} {
  func.func @_wm_roundtrip_kernel(%arg0: i32, %arg1: memref<12x128xf32, #tpu.memory_space<vmem>>, %arg2: memref<12x128xf32, #tpu.memory_space<vmem>>) attributes {dimension_semantics = [#tpu.dimension_semantics<parallel>], iteration_bounds = array<i64: 1>, scalar_prefetch = 0 : i64, scratch_operands = 0 : i64, tpu.core_type = #tpu.core_type<tc>, window_params = [{transform_indices = @transform_0, window_bounds = array<i64: 12, 128>}, {transform_indices = @transform_1, window_bounds = array<i64: 12, 128>}]} {
    %c0 = arith.constant 0 : index
    %c0_0 = arith.constant 0 : index
    %0 = vector.load %arg1[%c0, %c0_0] : memref<12x128xf32, #tpu.memory_space<vmem>>, vector<12x128xf32>
    %cst = arith.constant 1.275000e+02 : f32
    %1 = vector.broadcast %cst : f32 to vector<12x128xf32>
    %2 = arith.mulf %0, %1 : vector<12x128xf32>
    %cst_1 = arith.constant 1.280000e+02 : f32
    %3 = vector.broadcast %cst_1 : f32 to vector<12x128xf32>
    %4 = arith.addf %2, %3 : vector<12x128xf32>
    %cst_2 = arith.constant 0.000000e+00 : f32
    %cst_3 = arith.constant 2.550000e+02 : f32
    %5 = vector.broadcast %cst_2 : f32 to vector<12x128xf32>
    %6 = arith.maximumf %5, %4 : vector<12x128xf32>
    %7 = vector.broadcast %cst_3 : f32 to vector<12x128xf32>
    %8 = arith.minimumf %7, %6 : vector<12x128xf32>
    %9 = math.floor %8 : vector<12x128xf32>
    %cst_4 = arith.constant 0.00784313772 : f32
    %10 = vector.broadcast %cst_4 : f32 to vector<12x128xf32>
    %11 = arith.mulf %9, %10 : vector<12x128xf32>
    %cst_5 = arith.constant 1.000000e+00 : f32
    %12 = vector.broadcast %cst_5 : f32 to vector<12x128xf32>
    %13 = arith.subf %11, %12 : vector<12x128xf32>
    %c0_6 = arith.constant 0 : index
    %c0_7 = arith.constant 0 : index
    %14 = vector.load %arg2[%c0_6, %c0_7] : memref<12x128xf32, #tpu.memory_space<vmem>>, vector<12x128xf32>
    tpu.vector_store %arg2[%c0_6, %c0_7], %13 {strides = array<i32>} : memref<12x128xf32, #tpu.memory_space<vmem>>, vector<12x128xf32>,
    return
  }
  func.func @transform_0(%arg0: i32) -> (i32, i32) {
    %c0_i32 = arith.constant 0 : i32
    %c0_i32_0 = arith.constant 0 : i32
    return %arg0, %c0_i32 : i32, i32
  }
  func.func @transform_1(%arg0: i32) -> (i32, i32) {
    %c0_i32 = arith.constant 0 : i32
    %c0_i32_0 = arith.constant 0 : i32
    return %arg0, %c0_i32 : i32, i32
  }
}

</mosaic_0001>

<bundles_post_ra>
// kernel: watermark_encoder_model_forward.1
= control target key start
LH: loop header
LB: loop body
LE: loop exit
PB: predicated region body
PF: predicated region fallthrough
CT: control target
= control target key end

     0   :  { %s54_s0 = inlined_call_operand.vmem [shape: f32[12,128], index: 0, kind: input, shape index: {}]   ;;  %s55_s1 = inlined_call_operand.vmem [shape: f32[12,128], index: 1, kind: output, shape index: {}]  }
   0x1   :  { %v8_v0 = vld [vmem:[%s54_s0] sm:$0xff]  ;;  %v9_v1 = vld [vmem:[%s54_s0 + $0x8] sm:$0xf] }
   0x2   :  { %v10_v2 = vmul.f32 127.5, %v8_v0  ;;  %v11_v3 = vmul.f32 127.5, %v9_v1 }
   0x4   :  { %v12_v4 = vadd.f32 128.0, %v10_v2  ;;  %v13_v5 = vadd.f32 128.0, %v11_v3 }
   0x6   :  { %v14_v6 = vmax.f32 %v12_v4, 0.0  ;;  %v15_v7 = vmax.f32 %v13_v5, 0.0 }
   0x8   :  { %v16_v8 = vmin.f32 %v14_v6, 255.0  ;;  %v17_v9 = vmin.f32 %v15_v7, 255.0 }
   0xa   :  { %v18_v10 = vfloor.f32 %v16_v8  ;;  %v19_v11 = vfloor.f32 %v17_v9 }
   0xc   :  { %v20_v12 = vmul.f32 0.007843138, %v18_v10  ;;  %v21_v13 = vmul.f32 0.007843138, %v19_v11 }
   0xe   :  { %v30_v14 = vadd.f32 -1.0, %v20_v12  ;;  %v31_v15 = vadd.f32 -1.0, %v21_v13 }
  0x10   :  { %24 = vst [vmem:[%s55_s1] sm:$0xff] %v30_v14 }
  0x11   :  { %25 = vst [vmem:[%s55_s1 + $0x8] sm:$0xf] %v31_v15 }

</bundles_post_ra>
